<compile_context>
chip_gen: v7x
topology: tpu7x:2x2x1
jax: 0.10.0
libtpu: 0.0.40
codegen_flags: <defaults>
</compile_context>

<pallas_src>
import math
import functools

import jax
import jax.numpy as jnp
from jax.experimental import pallas as pl
from jax.experimental.pallas import tpu as pltpu


# ----------------------------- kernel bodies --------------------------------

def _softmax_dim_store(y, o_ref, eps):
    """SoftmaxDim epilogue: o = cat([softmax(y), softmax(-y)], -1).clamp(min=eps).

    y:     (TL, F) float32 logits
    o_ref: (TL, 2*F) output ref -- written with a single full-width store.
    """
    m = jnp.max(y, axis=-1, keepdims=True)           # cross-lane reduce (XLU)
    mn = jnp.min(y, axis=-1, keepdims=True)
    p = jnp.exp(y - m)                                # EUP
    n = jnp.exp(mn - y)                               # == exp(-y - max(-y))
    p = p / jnp.sum(p, axis=-1, keepdims=True)        # exact div; kernel is HBM-bound
    n = n / jnp.sum(n, axis=-1, keepdims=True)
    out = jnp.concatenate([p, n], axis=-1)            # (TL, 2F) slab
    o_ref[...] = jnp.maximum(out, eps).astype(o_ref.dtype)   # one unmasked store


def _feature_map_kernel(x_ref, o_ref, *, eps):
    # FeatureMap with the default Identity mlp:  out = SoftmaxDim(x)
    # x_ref: (TL, D) VMEM     o_ref: (TL, 2*D) VMEM
    _softmax_dim_store(x_ref[...].astype(jnp.float32), o_ref, eps)


def _feature_map_mlp_kernel(x_ref, w_ref, b_ref, o_ref, *, eps, skip_connection):
    # FeatureMap wrapping an xW + b (+ x) per-head MLP, fused with SoftmaxDim.
    # x_ref: (TL, D)  w_ref: (D, F) (same dtype as x)  b_ref: (1, F) f32
    # o_ref: (TL, 2*F)
    x = x_ref[...]                                    # keep I/O dtype for the MXU
    y = jnp.dot(x, w_ref[...], preferred_element_type=jnp.float32)
    y = y + b_ref[...]                                # per-feature bias (broadcast rows)
    if skip_connection:
        y = y + x.astype(jnp.float32)                 # requires D == F
    _softmax_dim_store(y, o_ref, eps)


# ------------------------------- wrapper -------------------------------------

def _sublane_multiple(itemsize):
    # Native second-minor tiling: 8 rows for 4-byte, 16 for 2-byte, 32 for 1-byte.
    return 8 * max(1, 4 // int(itemsize))


def _vmem_limit_bytes():
    """Scoped VMEM limit per generation: 32 MiB on v7x (64 MiB physical),
    64 MiB on v5e/v6e (128 MiB physical).  Safe fallback: 32 MiB."""
    limit = 32 * 1024 * 1024
    try:
        cap = int(pltpu.get_tpu_info().vmem_capacity_bytes)
        limit = max(32 * 1024 * 1024, min(64 * 1024 * 1024, cap // 2))
    except Exception:
        pass
    return limit


def _pick_seq_tile(L, row_bytes, budget_bytes, mult):
    """Largest row count (multiple of `mult`, capped at 8192) whose VMEM
    footprint fits `budget_bytes`.  TL does NOT have to divide L: the grid uses
    cdiv and Pallas clips the trailing partial block."""
    cap = (budget_bytes // max(row_bytes, 1)) // mult * mult
    cap = max(mult, cap)
    cap = min(cap, 8192)
    if L <= cap:
        return L          # single full-extent block along L (always legal)
    return cap            # multiple of `mult`; trailing partial block handled by Pallas


def feature_map(x, *, mlp_weight=None, mlp_bias=None, skip_connection=False,
                eps=1e-12, seq_tile=None):
    """FeatureMap forward.

    x:          (B, H, L, D)
    mlp_weight: optional (H, D, F) -- if given, y = x @ W_h + b_h (+ x), else y = x
    mlp_bias:   optional (H, F) per-head, per-feature bias
    returns:    (B, H, L, 2*F)   == clamp(cat([softmax(y), softmax(-y)], -1), eps)

    Note: output is lane-dense (width >= 128) for D >= 64; smaller head dims
    still work but use masked partial stores.
    """
    B, H, L, D = x.shape
    if mlp_weight is not None:
        Hw, Dw, F = mlp_weight.shape
        assert (Hw, Dw) == (H, D), "weight must be (H, D, F)"
        if skip_connection:
            assert D == F, "skip_connection requires head_dim == feature_dim"
        # Native-dtype MXU path (bf16 x bf16 -> f32 in production).
        mlp_weight = mlp_weight.astype(x.dtype)
        if mlp_bias is None:
            mlp_bias = jnp.zeros((H, F), dtype=jnp.float32)
        assert mlp_bias.shape == (H, F), "bias must be per-feature: (H, F)"
        # (H, 1, F) so the kernel block is a broadcastable (1, F) row.
        mlp_bias = mlp_bias.astype(jnp.float32).reshape(H, 1, F)
    else:
        F = D
    out_w = 2 * F
    io_itemsize = jnp.dtype(x.dtype).itemsize
    mult = _sublane_multiple(io_itemsize)

    # Per-row VMEM footprint: double-buffered x/out tiles + f32 temporaries
    # (upcast x or y, p, n, concat slab  ~ D + 5F f32 words per row).
    row_bytes = 2 * (D + out_w) * io_itemsize + 4 * (D + 5 * F)
    vmem_limit = _vmem_limit_bytes()
    TL = seq_tile if seq_tile is not None else _pick_seq_tile(
        L, row_bytes, vmem_limit // 2, mult)
    assert TL == L or TL % mult == 0, "seq_tile must be L or a sublane multiple"
    nL = pl.cdiv(L, TL)

    # Fold (B, H) into one leading parallel axis for even 2-TC sharding on v7x.
    BH = B * H
    x2 = x.reshape(BH, L, D)
    grid = (BH, nL)
    x_spec = pl.BlockSpec((None, TL, D), lambda bh, l: (bh, l, 0))
    o_spec = pl.BlockSpec((None, TL, out_w), lambda bh, l: (bh, l, 0))

    flops_softmax = 8 * B * H * L * out_w             # rough elementwise cost
    out_bytes = B * H * L * out_w * io_itemsize

    if mlp_weight is None:
        kernel = functools.partial(_feature_map_kernel, eps=eps)
        in_specs = [x_spec]
        operands = (x2,)
        cost = pl.CostEstimate(
            flops=flops_softmax,
            transcendentals=B * H * L * out_w,
            bytes_accessed=x.size * io_itemsize + out_bytes)
    else:
        kernel = functools.partial(_feature_map_mlp_kernel, eps=eps,
                                   skip_connection=skip_connection)
        in_specs = [
            x_spec,
            # this head's (D, F) weight (small; re-DMA per (b, h) is noise)
            pl.BlockSpec((None, D, F), lambda bh, l: (bh % H, 0, 0)),
            # this head's (1, F) per-feature bias
            pl.BlockSpec((None, 1, F), lambda bh, l: (bh % H, 0, 0)),
        ]
        operands = (x2, mlp_weight, mlp_bias)
        w_bytes = mlp_weight.size * jnp.dtype(mlp_weight.dtype).itemsize
        cost = pl.CostEstimate(
            flops=2 * B * H * L * D * F + flops_softmax,
            transcendentals=B * H * L * out_w,
            bytes_accessed=x.size * io_itemsize + w_bytes + out_bytes)

    out = pl.pallas_call(
        kernel,
        out_shape=jax.ShapeDtypeStruct((BH, L, out_w), x.dtype),
        grid_spec=pltpu.PrefetchScalarGridSpec(
            num_scalar_prefetch=0,
            grid=grid,
            in_specs=in_specs,
            out_specs=o_spec,
        ),
        compiler_params=pltpu.CompilerParams(
            # Every grid point writes a disjoint output block -> fully parallel;
            # lets v7x split the (B*H, nL) grid evenly across its two TCs.
            dimension_semantics=("parallel", "parallel"),
            vmem_limit_bytes=vmem_limit),
        cost_estimate=cost,
    )(*operands)
    return out.reshape(B, H, L, out_w)


# ------------------------- parameter init (deterministic) --------------------

def kaiming_uniform(key, shape, dtype=jnp.float32):
    """Matches torch.nn.init.kaiming_uniform_ defaults (a=0 -> gain=sqrt(2))."""
    fan_in = 1
    for s in shape[1:]:
        fan_in *= s
    bound = math.sqrt(2.0) * math.sqrt(3.0 / fan_in)
    return jax.random.uniform(key, shape, dtype=dtype, minval=-bound, maxval=bound)


# ------------------------------ reference ------------------------------------

def reference_feature_map(x, eps, weight=None, bias=None, skip_connection=False):
    xf = x.astype(jnp.float32)
    if weight is None:
        y = xf
    else:
        y = jnp.einsum('hdf,bhld->bhlf', weight.astype(jnp.float32), xf,
                       precision=jax.lax.Precision.HIGHEST)
        H, F = bias.shape
        y = y + bias.reshape(1, H, 1, F)
        if skip_connection:
            y = y + xf
    p = jax.nn.softmax(y, axis=-1)
    n = jax.nn.softmax(-y, axis=-1)
    return jnp.maximum(jnp.concatenate([p, n], axis=-1), eps).astype(x.dtype)


# --------------------------------- demo ---------------------------------------

if __name__ == "__main__":
    key = jax.random.PRNGKey(0)
    k_x, k_w, k_b, k_x3, k_x4 = jax.random.split(key, 5)

    B, H, L = 2, 4, 64
    D = 64          # head_dim  (2*D = 128 -> lane-dense output)
    F = 64          # feature_dim
    eps = 1e-12

    x = jax.random.normal(k_x, (B, H, L, D), dtype=jnp.float32)

    # --- config 1: module defaults (mlp = Identity), f32 ---------------------
    out = feature_map(x, eps=eps)
    jax.block_until_ready(out)
    ref = reference_feature_map(x, eps=eps)
    assert out.shape == (B, H, L, 2 * D)
    assert jnp.allclose(out, ref, atol=1e-5, rtol=1e-5), "mismatch (identity mlp)"

    # --- config 2: FeatureMap wrapping a per-head xW + b (+ x) MLP -----------
    w = kaiming_uniform(k_w, (H, D, F))                 # (H, head_dim, feat_dim)
    b = kaiming_uniform(k_b, (H, F))                    # per-head, per-feature bias
    out2 = feature_map(x, mlp_weight=w, mlp_bias=b, skip_connection=True, eps=eps)
    jax.block_until_ready(out2)
    ref2 = reference_feature_map(x, eps=eps, weight=w, bias=b, skip_connection=True)
    assert out2.shape == (B, H, L, 2 * F)
    assert jnp.allclose(out2, ref2, atol=1e-5, rtol=1e-5), "mismatch (mlp + skip)"

    # --- config 3: bf16 I/O (production dtype), Identity mlp -----------------
    x3 = jax.random.normal(k_x3, (B, H, L, D), dtype=jnp.float32).astype(jnp.bfloat16)
    out3 = feature_map(x3, eps=eps)
    jax.block_until_ready(out3)
    ref3 = reference_feature_map(x3, eps=eps)
    assert out3.dtype == jnp.bfloat16
    assert jnp.allclose(out3.astype(jnp.float32), ref3.astype(jnp.float32),
                        atol=1e-3, rtol=2e-2), "mismatch (bf16 identity)"

    # --- config 4: L not a multiple of the tile (trailing partial block) -----
    x4 = jax.random.normal(k_x4, (1, 2, 200, D), dtype=jnp.float32)
    out4 = feature_map(x4, eps=eps, seq_tile=64)        # cdiv(200, 64) = 4 tiles
    jax.block_until_ready(out4)
    ref4 = reference_feature_map(x4, eps=eps)
    assert out4.shape == (1, 2, 200, 2 * D)
    assert jnp.allclose(out4, ref4, atol=1e-5, rtol=1e-5), "mismatch (partial tile)"

    print("KERNEL_OK")
</pallas_src>

<mosaic_0001>
module attributes {stable_mosaic.version = 11 : i64} {
  func.func @_feature_map_kernel(%arg0: i32, %arg1: i32, %arg2: memref<1x64x64xf32, #tpu.memory_space<vmem>>, %arg3: memref<1x64x128xf32, #tpu.memory_space<vmem>>) attributes {dimension_semantics = [#tpu.dimension_semantics<parallel>, #tpu.dimension_semantics<parallel>], iteration_bounds = array<i64: 8, 1>, scalar_prefetch = 0 : i64, scratch_operands = 0 : i64, tpu.core_type = #tpu.core_type<tc>, window_params = [{transform_indices = @transform_0, window_bounds = array<i64: 1, 64, 64>}, {transform_indices = @transform_1, window_bounds = array<i64: 1, 64, 128>}]} {
    %c0 = arith.constant 0 : index
    %c0_0 = arith.constant 0 : index
    %c0_1 = arith.constant 0 : index
    %0 = vector.load %arg2[%c0, %c0_0, %c0_1] : memref<1x64x64xf32, #tpu.memory_space<vmem>>, vector<1x64x64xf32>
    %1 = vector.shape_cast %0 : vector<1x64x64xf32> to vector<64x64xf32>
    %cst = arith.constant dense<0xFF800000> : vector<64xf32>
    %2 = vector.multi_reduction <maximumf>, %1, %cst [1] : vector<64x64xf32> to vector<64xf32>
    %3 = vector.shape_cast %2 : vector<64xf32> to vector<64x1xf32>
    %cst_2 = arith.constant dense<0x7F800000> : vector<64xf32>
    %4 = vector.multi_reduction <minimumf>, %1, %cst_2 [1] : vector<64x64xf32> to vector<64xf32>
    %5 = vector.shape_cast %4 : vector<64xf32> to vector<64x1xf32>
    %6 = vector.broadcast %3 : vector<64x1xf32> to vector<64x64xf32>
    %7 = arith.subf %1, %6 : vector<64x64xf32>
    %8 = math.exp %7 : vector<64x64xf32>
    %9 = vector.broadcast %5 : vector<64x1xf32> to vector<64x64xf32>
    %10 = arith.subf %9, %1 : vector<64x64xf32>
    %11 = math.exp %10 : vector<64x64xf32>
    %cst_3 = arith.constant dense<0.000000e+00> : vector<64xf32>
    %12 = vector.multi_reduction <add>, %8, %cst_3 [1] : vector<64x64xf32> to vector<64xf32>
    %13 = vector.shape_cast %12 : vector<64xf32> to vector<64x1xf32>
    %14 = vector.broadcast %13 : vector<64x1xf32> to vector<64x64xf32>
    %15 = arith.divf %8, %14 : vector<64x64xf32>
    %cst_4 = arith.constant dense<0.000000e+00> : vector<64xf32>
    %16 = vector.multi_reduction <add>, %11, %cst_4 [1] : vector<64x64xf32> to vector<64xf32>
    %17 = vector.shape_cast %16 : vector<64xf32> to vector<64x1xf32>
    %18 = vector.broadcast %17 : vector<64x1xf32> to vector<64x64xf32>
    %19 = arith.divf %11, %18 : vector<64x64xf32>
    %20 = tpu.concatenate %15, %19 in 1 : vector<64x64xf32>, vector<64x64xf32> -> vector<64x128xf32>
    %cst_5 = arith.constant 9.99999996E-13 : f32
    %21 = vector.broadcast %cst_5 : f32 to vector<64x128xf32>
    %22 = arith.maximumf %20, %21 : vector<64x128xf32>
    %c0_6 = arith.constant 0 : index
    %c0_7 = arith.constant 0 : index
    %c0_8 = arith.constant 0 : index
    %23 = vector.load %arg3[%c0_6, %c0_7, %c0_8] : memref<1x64x128xf32, #tpu.memory_space<vmem>>, vector<1x64x128xf32>
    %24 = vector.shape_cast %23 : vector<1x64x128xf32> to vector<64x128xf32>
    %25 = vector.shape_cast %22 : vector<64x128xf32> to vector<1x64x128xf32>
    tpu.vector_store %arg3[%c0_6, %c0_7, %c0_8], %25 {strides = array<i32>} : memref<1x64x128xf32, #tpu.memory_space<vmem>>, vector<1x64x128xf32>,
    return
  }
  func.func @transform_0(%arg0: i32, %arg1: i32) -> (i32, i32, i32) {
    %c0_i32 = arith.constant 0 : i32
    %c0_i32_0 = arith.constant 0 : i32
    return %arg0, %arg1, %c0_i32 : i32, i32, i32
  }
  func.func @transform_1(%arg0: i32, %arg1: i32) -> (i32, i32, i32) {
    %c0_i32 = arith.constant 0 : i32
    %c0_i32_0 = arith.constant 0 : i32
    return %arg0, %arg1, %c0_i32 : i32, i32, i32
  }
}

</mosaic_0001>

<bundles_post_ra>
// kernel: tpu_custom_call.1
= control target key start
LH: loop header
LB: loop body
LE: loop exit
PB: predicated region body
PF: predicated region fallthrough
CT: control target
= control target key end

     0   :  { %6 = vsyncpa [#allocation3], 0  ;;  %s1118_s0 = inlined_call_operand.hbm [shape: f32[8,64,64], index: 0, kind: input, shape index: {}]   ;;  %s1119_s1 = inlined_call_operand.hbm [shape: f32[8,64,128], index: 1, kind: output, shape index: {}]  }
   0x1   :  { %8 = vsyncpa [#allocation3 + $0x1], 0 }
   0x2   :  { %9 = vsyncpa [#allocation4], 0 }
   0x3   :  { %11 = vsyncpa [#allocation4 + $0x1], 0  ;;  %s778_s6 = smov 0   ;;  %s780_s7 = smov 0  }
   0x4   :  { %s782_s8 = smov 0   ;;  %s784_s9 = smov 0  }
   0x5   :  { %s786_s10 = smov 0   ;;  %s788_s11 = smov 0  }
   0x6 LB: > { %s499_s12 = sadd.s32 4294967295, %s759_s11   ;;  %s500_s13 = sadd.s32 4294967294, %s759_s11   ;;  %s759_s11 = sphi %s788_s11, %s17_s11   ;;  %s755_s10 = sphi %s786_s10, %s1133_s10   ;;  %s751_s9 = sphi %s784_s9, %s1132_s9   ;;  %s747_s8 = sphi %s782_s8, %s1131_s8   ;;  %s743_s7 = sphi %s780_s7, %s1130_s7   ;;  %s739_s6 = sphi %s778_s6, %s1129_s6  }
   0x7   : > { %s29_s14 = sadd.s32 1, %s755_s10  ;;  %s38_s15 = sadd.s32 1, %s747_s8 }
   0x8   : > { %p31_p0 = scmp.ge.s32.totalorder %s29_s14, 8  ;;  %p45_p1 = scmp.ne.s32.totalorder %s747_s8, %s743_s7 }
   0x9   : > { %p46_p2 = scmp.eq.s32.totalorder %s759_s11, 0  ;;  %p51_p3 = scmp.ne.s32.totalorder %s743_s7, %s739_s6 }
   0xa   : > { %s1135_s14 = smov (%p31_p0, %s29_s14), 0  ;;  %p52_p5 = scmp.eq.s32.totalorder %s499_s12, 0 }
   0xb   : > { %p819_p4 = por %p46_p2, %p45_p1  ;;  %s33_s17 = ssub.s32 %s755_s10, %s1135_s14 }
   0xc   : > { %p77_p6 = scmp.eq.s32.totalorder %s499_s12, 7  ;;  %p36_p7 = scmp.eq.s32.totalorder %s33_s17, 0 }
   0xd   : > { %p825_p8 = por %p52_p5, %p51_p3  ;;  %p83_p10 = scmp.eq.s32.totalorder %s500_s13, 7 }
   0xe   : > { %p829_p9 = por %p77_p6, %p45_p1  ;;  %p528_p12 = scmp.lt.s32.totalorder %s759_s11, 8 }
   0xf   : > { %s834_s20 = scalar_select %p36_p7, %s747_s8, %s38_s15  }
  0x10   : > { %s1123_s19 = scalar_select %p829_p9, 1, 0 }
  0x11   : > { %p836_p11 = por %p83_p10, %p51_p3  ;;  %s103_s22 = sand.u32 1, %s747_s8  }
  0x12   : > { %s503_s23 = sshll.u32 %s103_s22, 6  ;;  %s514_s24 = sshll.u32 %s755_s10, 10 }
  0x13   : > { %s1124_s21 = scalar_select %p836_p11, 1, 0 }
  0x14   : > { %s846_s27 = scalar_lea.hbm %s1118_s0, %s514_s24  ;;  %s107_s28 = scalar_lea.vmem [#allocation2], %s503_s23 }
  0x15   : > { %s116_s29 = sshll.u32 %s107_s28, 4  ;;  %p852_p13 = pnand %p528_p12, %p819_p4  ;;  %s848_s29 = int_to_ptr.vmem [resolvable:$true] %s116_s29 }
  0x16   : > { %s857_s2 = scalar_lea.sflag [#allocation3], %s103_s22  ;;  %s647_s3 = scalar_lea.hbm %s846_s27, 1024 }
  0x17   : > { %p648_p1 = scmp.ne.s32.totalorder %s846_s27, %s647_s3  ;;  %p649_p2 = pneg %p852_p13 }
  0x18   : > { %s652_s12 = scalar_lea.hbm %s1118_s0, 8192  ;;  %p653_p4 = scmp.lt.u32.totalorder %s846_s27, %s1118_s0 }
  0x19   : > { %p650_p3 = pnand %p649_p2, %p648_p1  ;;  %p654_p6 = scmp.lt.u32.totalorder %s652_s12, %s647_s3 }
  0x1a   : > { %p656_p10 = scmp.lt.u32.totalorder %s647_s3, %s846_s27 }
  0x1b   : > { %p651_p5 = pneg %p650_p3  ;;  %p655_p7 = por %p654_p6, %p653_p4 }
  0x1d   : > { %p657_p12 = por %p656_p10, %p655_p7 }
  0x1f   : > { %p658_p0 = pnand %p657_p12, %p651_p5 }
  0x21   : > { %661 = shalt.err (!%p658_p0)
}
  0x22   : > { %s662_s16 = scalar_lea.vmem %s848_s29, 1024  ;;  %s761_s17 = smov [#allocation2]  }
  0x23   : > { %p663_p1 = scmp.ne.s32.totalorder %s848_s29, %s662_s16  ;;  %s667_s22 = sshll.u32 %s761_s17, 4  ;;  %s668_s22 = int_to_ptr.vmem [resolvable:$false] %s667_s22 }
  0x24   : > { %s669_s23 = scalar_lea.vmem %s668_s22, 2048  ;;  %p670_p9 = scmp.lt.s32.totalorder %s848_s29, %s668_s22 }
  0x25   : > { %p665_p3 = pnand %p663_p1, %p649_p2  ;;  %p671_p4 = scmp.lt.s32.totalorder %s669_s23, %s662_s16 }
  0x27   : > { %p666_p11 = pneg %p665_p3  ;;  %p672_p6 = por %p671_p4, %p670_p9 }
  0x29   : > { %p673_p7 = pnand %p672_p6, %p666_p11 }
  0x2b   : > { %676 = shalt.err (!%p673_p7)
}
  0x2c   : > { %s762_s24 = smov 128   ;;  %s763_s25 = smov 8  }
  0x2d   : > { %523 = dma.hbm_to_vmem [thread:$0]  (!%p852_p13), %s846_s27, 1024, %s848_s29, %s857_s2, %s762_s24, %s762_s24, %s763_s25  }
  0x2e   : > { %p124_p0 = scmp.lt.s32.totalorder %s759_s11, 9  ;;  %p1126_p2 = scmp.ge.s32.totalorder %s759_s11, 1 }
  0x30   : > { %p125_p5 = pnand %p1126_p2, %p124_p0 }
  0x31   : > { %s889_s26 = sand.u32 (!%p125_p5), 1, %s743_s7  }
  0x32   : > { %128 = sbr.rel (%p125_p5) target bundleno = 526 (0x20e), region = 24  ;;  %s507_s28 = sshll.u32 (!%p125_p5), %s889_s26, 6 }
  0x33   : > { %s131_s3 = scalar_lea.sflag (!%p125_p5), [#allocation3], %s889_s26  ;;  %s134_s4 = scalar_lea.vmem (!%p125_p5), [#allocation2], %s507_s28 }
  0x39   : > { %730 = dma.done.wait (%p825_p8), %s131_s3, 1024  }
  0x3a   : > { %732 = vsyncadd (%p825_p8), %s131_s3, 4294966272  ;;  %vm163_vm0 = vcmask 523264   ;;  %v899_v0 = vld [vmem:[%s134_s4] sm:$0xff]  ;;  %v901_v1 = vld [vmem:[%s134_s4 + $0x10] sm:$0xff]  ;;  %s764_s18 = smov 64   ;;  %s1040_s27 = scalar_lea.vmem [#allocation5], %s507_s28 }
  0x3b   : > { %v903_v2 = vld [vmem:[%s134_s4 + $0x8] sm:$0xff]  ;;  %v188_v3 = vsel %vm163_vm0, %v899_v0, inf  ;;  %v194_v4 = vsel %vm163_vm0, %v901_v1, inf  ;;  %v909_v5 = vld [vmem:[%s134_s4 + $0x18] sm:$0xff]  ;;  %v915_v8 = vld [vmem:[%s134_s4 + $0x20] sm:$0xff]  ;;  %v164_v16 = vsel %vm163_vm0, %v899_v0, -inf }
  0x3c   : > { %189 = vmin.xlane.f32.xlu0 %v188_v3  ;;  %195 = vmin.xlane.f32.xlu1 %v194_v4  ;;  %v191_v6 = vsel %vm163_vm0, %v903_v2, inf  ;;  %v197_v7 = vsel %vm163_vm0, %v909_v5, inf  ;;  %v917_v9 = vld [vmem:[%s134_s4 + $0x28] sm:$0xff]  ;;  %v200_v10 = vsel %vm163_vm0, %v915_v8, inf  ;;  %v923_v12 = vld [vmem:[%s134_s4 + $0x30] sm:$0xff]  ;;  %v925_v13 = vld [vmem:[%s134_s4 + $0x38] sm:$0xff] }
  0x3d   : > { %v203_v11 = vsel %vm163_vm0, %v917_v9, inf  ;;  %v206_v14 = vsel %vm163_vm0, %v923_v12, inf  ;;  %v209_v15 = vsel %vm163_vm0, %v925_v13, inf  ;;  %v167_v17 = vsel %vm163_vm0, %v903_v2, -inf  ;;  %s412_s29 = sshll.u32 %s1040_s27, 4  ;;  %s515_s30 = sshll.u32 %s751_s9, 10  ;;  %s1062_s29 = int_to_ptr.vmem [resolvable:$true] %s412_s29 }
  0x3e   : > { %v170_v18 = vsel %vm163_vm0, %v901_v1, -inf  ;;  %v173_v19 = vsel %vm163_vm0, %v909_v5, -inf  ;;  %v176_v20 = vsel %vm163_vm0, %v915_v8, -inf  ;;  %v179_v21 = vsel %vm163_vm0, %v917_v9, -inf  ;;  %s1069_s12 = scalar_lea.hbm %s1119_s1, %s515_s30  ;;  %s397_s13 = scalar_lea.sflag [#allocation4], %s889_s26 }
  0x3f   : > { %v182_v22 = vsel %vm163_vm0, %v923_v12, -inf  ;;  %v185_v23 = vsel %vm163_vm0, %v925_v13, -inf  ;;  %s677_s9 = scalar_lea.vmem %s1062_s29, 1024  ;;  %p1127_p9 = scmp.ne.s32.totalorder %s1123_s19, 0 }
  0x40   : > { %192 = vmin.xlane.f32.xlu0 %v191_v6  ;;  %198 = vmin.xlane.f32.xlu1 %v197_v7  ;;  %p678_p8 = scmp.ne.s32.totalorder %s1062_s29, %s677_s9  ;;  %s765_s15 = smov [#allocation5]  }
  0x41   : > { %s681_s16 = sshll.u32 %s765_s15, 4  ;;  %s682_s16 = int_to_ptr.vmem [resolvable:$false] %s681_s16 }
  0x42   : > { %p679_p11 = pnand %p678_p8, %p1127_p9  ;;  %s683_s17 = scalar_lea.vmem %s682_s16, 2048 }
  0x43   : > { %p684_p10 = scmp.lt.s32.totalorder %s1062_s29, %s682_s16  ;;  %p685_p12 = scmp.lt.s32.totalorder %s683_s17, %s677_s9 }
  0x44   : > { %201 = vmin.xlane.f32.xlu0 %v200_v10  ;;  %204 = vmin.xlane.f32.xlu1 %v203_v11  ;;  %p680_p13 = pneg %p679_p11 }
  0x45   : > { %p686_p1 = por %p685_p12, %p684_p10 }
  0x47   : > { %p687_p3 = pnand %p686_p1, %p680_p13 }
  0x48   : > { %207 = vmin.xlane.f32.xlu0 %v206_v14  ;;  %210 = vmin.xlane.f32.xlu1 %v209_v15 }
  0x4c   : > { %165 = vmax.xlane.f32.xlu0 %v164_v16  ;;  %168 = vmax.xlane.f32.xlu1 %v167_v17 }
  0x50   : > { %171 = vmax.xlane.f32.xlu0 %v170_v18  ;;  %174 = vmax.xlane.f32.xlu1 %v173_v19 }
  0x54   : > { %177 = vmax.xlane.f32.xlu0 %v176_v20  ;;  %180 = vmax.xlane.f32.xlu1 %v179_v21 }
  0x58   : > { %183 = vmax.xlane.f32.xlu0 %v182_v22  ;;  %186 = vmax.xlane.f32.xlu1 %v185_v23 }
  0xc9   : > { %v190_v24 = vpop.xlane.xlu0 %189  ;;  %v196_v25 = vpop.xlane.xlu1 %195 }
  0xca   : > { %v236_v26 = vsub.f32 %v190_v24, %v899_v0  ;;  %v238_v27 = vsub.f32 %v196_v25, %v901_v1 }
  0xcc   : > { %v244_v28 = vmul.f32 1.442695, %v236_v26  ;;  %v248_v29 = vmul.f32 1.442695, %v238_v27 }
  0xcd   : > { %v193_v30 = vpop.xlane.xlu0 %192  ;;  %v199_v31 = vpop.xlane.xlu1 %198 }
  0xce   : > { %583 = vpow2.f32 %v244_v28  ;;  %v237_v32 = vsub.f32 %v193_v30, %v903_v2  ;;  %v239_v33 = vsub.f32 %v199_v31, %v909_v5 }
  0xcf   : > { %585 = vpow2.f32 %v248_v29 }
  0xd0   : > { %v246_v34 = vmul.f32 1.442695, %v237_v32  ;;  %v250_v35 = vmul.f32 1.442695, %v239_v33 }
  0xd1   : > { %v202_v36 = vpop.xlane.xlu0 %201  ;;  %v205_v37 = vpop.xlane.xlu1 %204 }
  0xd2   : > { %587 = vpow2.f32 %v246_v34  ;;  %v240_v38 = vsub.f32 %v202_v36, %v915_v8  ;;  %v241_v39 = vsub.f32 %v205_v37, %v917_v9 }
  0xd3   : > { %589 = vpow2.f32 %v250_v35 }
  0xd4   : > { %v252_v40 = vmul.f32 1.442695, %v240_v38  ;;  %v254_v41 = vmul.f32 1.442695, %v241_v39 }
  0xd5   : > { %v208_v42 = vpop.xlane.xlu0 %207  ;;  %v211_v43 = vpop.xlane.xlu1 %210 }
  0xd6   : > { %591 = vpow2.f32 %v252_v40  ;;  %v242_v44 = vsub.f32 %v208_v42, %v923_v12  ;;  %v243_v45 = vsub.f32 %v211_v43, %v925_v13 }
  0xd7   : > { %593 = vpow2.f32 %v254_v41 }
  0xd8   : > { %v955_v46 = vpop.eup %583  ;;  %v256_v47 = vmul.f32 1.442695, %v242_v44  ;;  %v258_v48 = vmul.f32 1.442695, %v243_v45 }
  0xd9   : > { %v957_v49 = vpop.eup %585  ;;  %v166_v50 = vpop.xlane.xlu0 %165  ;;  %v300_v51 = vsel %vm163_vm0, %v955_v46, 0.0 }
  0xda   : > { %v169_v52 = vpop.xlane.xlu1 %168  ;;  %595 = vpow2.f32 %v256_v47  ;;  %v212_v53 = vsub.f32 %v899_v0, %v166_v50  ;;  %301 = vadd.xlane.f32.xlu0 %v300_v51  ;;  %v306_v55 = vsel %vm163_vm0, %v957_v49, 0.0 }
  0xdb   : > { %v213_v54 = vsub.f32 %v903_v2, %v169_v52  ;;  %597 = vpow2.f32 %v258_v48 }
  0xdc   : > { %v965_v56 = vpop.eup %587  ;;  %v220_v57 = vmul.f32 1.442695, %v212_v53 }
  0xdd   : > { %v222_v58 = vmul.f32 1.442695, %v213_v54  ;;  %v967_v59 = vpop.eup %589  ;;  %v172_v60 = vpop.xlane.xlu0 %171  ;;  %v303_v61 = vsel %vm163_vm0, %v965_v56, 0.0 }
  0xde   : > { %v175_v62 = vpop.xlane.xlu1 %174  ;;  %599 = vpow2.f32 %v220_v57  ;;  %v214_v63 = vsub.f32 %v901_v1, %v172_v60  ;;  %304 = vadd.xlane.f32.xlu1 %v303_v61  ;;  %307 = vadd.xlane.f32.xlu0 %v306_v55  ;;  %v309_v2 = vsel %vm163_vm0, %v967_v59, 0.0 }
  0xdf   : > { %v215_v0 = vsub.f32 %v909_v5, %v175_v62  ;;  %601 = vpow2.f32 %v222_v58 }
  0xe0   : > { %v975_v3 = vpop.eup %591  ;;  %v224_v4 = vmul.f32 1.442695, %v214_v63 }
  0xe1   : > { %v226_v6 = vmul.f32 1.442695, %v215_v0  ;;  %v977_v7 = vpop.eup %593  ;;  %v178_v10 = vpop.xlane.xlu0 %177  ;;  %v312_v11 = vsel %vm163_vm0, %v975_v3, 0.0 }
  0xe2   : > { %v181_v14 = vpop.xlane.xlu1 %180  ;;  %603 = vpow2.f32 %v224_v4  ;;  %v216_v1 = vsub.f32 %v915_v8, %v178_v10  ;;  %310 = vadd.xlane.f32.xlu1 %v309_v2  ;;  %313 = vadd.xlane.f32.xlu0 %v312_v11  ;;  %v315_v15 = vsel %vm163_vm0, %v977_v7, 0.0 }
  0xe3   : > { %v217_v5 = vsub.f32 %v917_v9, %v181_v14  ;;  %605 = vpow2.f32 %v226_v6 }
  0xe4   : > { %v985_v16 = vpop.eup %595  ;;  %v228_v17 = vmul.f32 1.442695, %v216_v1 }
  0xe5   : > { %v230_v18 = vmul.f32 1.442695, %v217_v5  ;;  %v987_v19 = vpop.eup %597  ;;  %v184_v20 = vpop.xlane.xlu0 %183  ;;  %v318_v21 = vsel %vm163_vm0, %v985_v16, 0.0 }
  0xe6   : > { %v187_v22 = vpop.xlane.xlu1 %186  ;;  %607 = vpow2.f32 %v228_v17  ;;  %v218_v8 = vsub.f32 %v923_v12, %v184_v20  ;;  %316 = vadd.xlane.f32.xlu1 %v315_v15  ;;  %319 = vadd.xlane.f32.xlu0 %v318_v21  ;;  %v321_v23 = vsel %vm163_vm0, %v987_v19, 0.0 }
  0xe7   : > { %v219_v9 = vsub.f32 %v925_v13, %v187_v22  ;;  %609 = vpow2.f32 %v230_v18 }
  0xe8   : > { %v995_v24 = vpop.eup %599  ;;  %v232_v25 = vmul.f32 1.442695, %v218_v8 }
  0xe9   : > { %v234_v26 = vmul.f32 1.442695, %v219_v9  ;;  %v997_v27 = vpop.eup %601  ;;  %v260_v28 = vsel %vm163_vm0, %v995_v24, 0.0 }
  0xea   : > { %611 = vpow2.f32 %v232_v25  ;;  %322 = vadd.xlane.f32.xlu1 %v321_v23  ;;  %261 = vadd.xlane.f32.xlu0 %v260_v28  ;;  %v263_v12 = vsel %vm163_vm0, %v997_v27, 0.0 }
  0xeb   : > { %613 = vpow2.f32 %v234_v26 }
  0xec   : > { %v1003_v13 = vpop.eup %603 }
  0xed   : > { %v1005_v29 = vpop.eup %605  ;;  %v266_v30 = vsel %vm163_vm0, %v1003_v13, 0.0 }
  0xee   : > { %264 = vadd.xlane.f32.xlu1 %v263_v12  ;;  %267 = vadd.xlane.f32.xlu0 %v266_v30  ;;  %v269_v31 = vsel %vm163_vm0, %v1005_v29, 0.0 }
  0xf0   : > { %v1011_v32 = vpop.eup %607 }
  0xf1   : > { %v1013_v33 = vpop.eup %609  ;;  %v272_v34 = vsel %vm163_vm0, %v1011_v32, 0.0 }
  0xf2   : > { %270 = vadd.xlane.f32.xlu1 %v269_v31  ;;  %273 = vadd.xlane.f32.xlu0 %v272_v34  ;;  %v275_v35 = vsel %vm163_vm0, %v1013_v33, 0.0 }
  0xf4   : > { %v1019_v36 = vpop.eup %611 }
  0xf5   : > { %v1021_v37 = vpop.eup %613  ;;  %v278_v38 = vsel %vm163_vm0, %v1019_v36, 0.0 }
  0xf6   : > { %276 = vadd.xlane.f32.xlu1 %v275_v35  ;;  %279 = vadd.xlane.f32.xlu0 %v278_v38  ;;  %v281_v39 = vsel %vm163_vm0, %v1021_v37, 0.0 }
  0xfa   : > { %282 = vadd.xlane.f32.xlu1 %v281_v39 }
 0x167   : > { %v302_v40 = vpop.xlane.xlu0 %301 }
 0x168   : > { %615 = vrcp.f32 %v302_v40 }
 0x16b   : > { %v305_v41 = vpop.xlane.xlu1 %304  ;;  %v308_v42 = vpop.xlane.xlu0 %307 }
 0x16c   : > { %617 = vrcp.f32 %v305_v41 }
 0x16d   : > { %619 = vrcp.f32 %v308_v42 }
 0x16f   : > { %v311_v43 = vpop.xlane.xlu1 %310  ;;  %v314_v44 = vpop.xlane.xlu0 %313 }
 0x170   : > { %621 = vrcp.f32 %v314_v44 }
 0x171   : > { %623 = vrcp.f32 %v311_v43 }
 0x172   : > { %v616_v45 = vpop.eup %615 }
 0x173   : > { %v317_v47 = vpop.xlane.xlu1 %316  ;;  %v320_v48 = vpop.xlane.xlu0 %319  ;;  %v325_v50 = vmul.f32 %v616_v45, %v955_v46 }
 0x174   : > { %625 = vrcp.f32 %v320_v48 }
 0x175   : > { %348 = vrot.lane.b32.xlu0 %v325_v50, %s764_s18  ;;  %627 = vrcp.f32 %v317_v47 }
 0x176   : > { %v618_v51 = vpop.eup %617 }
 0x177   : > { %v323_v52 = vpop.xlane.xlu1 %322  ;;  %v327_v53 = vmul.f32 %v618_v51, %v965_v56  ;;  %v620_v54 = vpop.eup %619 }
 0x178   : > { %629 = vrcp.f32 %v323_v52  ;;  %v329_v57 = vmul.f32 %v620_v54, %v957_v49  ;;  %v262_v49 = vpop.xlane.xlu0 %261 }
 0x179   : > { %350 = vrot.lane.b32.xlu1 %v327_v53, %s764_s18  ;;  %631 = vrcp.f32 %v262_v49 }
 0x17a   : > { %v622_v55 = vpop.eup %621 }
 0x17b   : > { %v624_v58 = vpop.eup %623  ;;  %v333_v60 = vmul.f32 %v622_v55, %v975_v3  ;;  %v265_v4 = vpop.xlane.xlu1 %264 }
 0x17c   : > { %v331_v61 = vmul.f32 %v624_v58, %v967_v59  ;;  %v268_v3 = vpop.xlane.xlu0 %267  ;;  %633 = vrcp.f32 %v265_v4 }
 0x17d   : > { %352 = vrot.lane.b32.xlu1 %v329_v57, %s764_s18  ;;  %356 = vrot.lane.b32.xlu0 %v333_v60, %s764_s18  ;;  %635 = vrcp.f32 %v268_v3 }
 0x17e   : > { %v626_v46 = vpop.eup %625 }
 0x17f   : > { %v628_v62 = vpop.eup %627  ;;  %v337_v63 = vmul.f32 %v626_v46, %v985_v16  ;;  %v271_v6 = vpop.xlane.xlu1 %270 }
 0x180   : > { %v335_v56 = vmul.f32 %v628_v62, %v977_v7  ;;  %v274_v10 = vpop.xlane.xlu0 %273 }
 0x181   : > { %354 = vrot.lane.b32.xlu1 %v331_v61, %s764_s18  ;;  %360 = vrot.lane.b32.xlu0 %v337_v63, %s764_s18  ;;  %637 = vrcp.f32 %v274_v10 }
 0x182   : > { %v630_v0 = vpop.eup %629  ;;  %639 = vrcp.f32 %v271_v6 }
 0x183   : > { %v339_v2 = vmul.f32 %v630_v0, %v987_v19  ;;  %v277_v59 = vpop.xlane.xlu1 %276  ;;  %v632_v11 = vpop.eup %631 }
 0x184   : > { %v280_v14 = vpop.xlane.xlu0 %279  ;;  %v285_v7 = vmul.f32 %v632_v11, %v995_v24 }
 0x185   : > { %358 = vrot.lane.b32.xlu1 %v335_v56, %s764_s18  ;;  %641 = vrcp.f32 %v280_v14 }
 0x186   : > { %v634_v1 = vpop.eup %633  ;;  %643 = vrcp.f32 %v277_v59 }
 0x187   : > { %v283_v5 = vpop.xlane.xlu1 %282  ;;  %v287_v18 = vmul.f32 %v634_v1, %v997_v27  ;;  %v636_v19 = vpop.eup %635 }
 0x188   : > { %645 = vrcp.f32 %v283_v5  ;;  %v289_v9 = vmul.f32 %v636_v19, %v1003_v13 }
 0x189   : > { %362 = vrot.lane.b32.xlu1 %v339_v2, %s764_s18 }
 0x18b   : > { %v638_v21 = vpop.eup %637 }
 0x18c   : > { %v640_v23 = vpop.eup %639  ;;  %v293_v25 = vmul.f32 %v638_v21, %v1011_v32 }
 0x18d   : > { %v291_v34 = vmul.f32 %v640_v23, %v1005_v29 }
 0x18f   : > { %v642_v26 = vpop.eup %641 }
 0x190   : > { %v644_v13 = vpop.eup %643  ;;  %v297_v38 = vmul.f32 %v642_v26, %v1019_v36 }
 0x191   : > { %v295_v43 = vmul.f32 %v644_v13, %v1013_v33 }
 0x192   : > { %v646_v29 = vpop.eup %645 }
 0x193   : > { %v299_v47 = vmul.f32 %v646_v29, %v1021_v37 }
 0x1e7   : > { %v349_v15 = vpop.permute.xlu0 %348 }
 0x1e8   : > { %v372_v16 = vsel %vm163_vm0, %v285_v7, %v349_v15 }
 0x1e9   : > { %v380_v17 = vmax.f32 %v372_v16, 1e-12 }
 0x1eb   : > { %388 = vst [vmem:[%s1040_s27] sm:$0xff] %v380_v17  ;;  %v351_v20 = vpop.permute.xlu1 %350 }
 0x1ec   : > { %v373_v22 = vsel %vm163_vm0, %v287_v18, %v351_v20 }
 0x1ed   : > { %v381_v8 = vmax.f32 %v373_v22, 1e-12 }
 0x1ef   : > { %389 = vst [vmem:[%s1040_s27 + $0x8] sm:$0xff] %v381_v8  ;;  %v353_v24 = vpop.permute.xlu1 %352  ;;  %v357_v28 = vpop.permute.xlu0 %356 }
 0x1f0   : > { %v374_v27 = vsel %vm163_vm0, %v289_v9, %v353_v24  ;;  %v376_v30 = vsel %vm163_vm0, %v293_v25, %v357_v28 }
 0x1f1   : > { %v382_v12 = vmax.f32 %v374_v27, 1e-12  ;;  %v384_v31 = vmax.f32 %v376_v30, 1e-12 }
 0x1f3   : > { %390 = vst [vmem:[%s1040_s27 + $0x10] sm:$0xff] %v382_v12  ;;  %v355_v35 = vpop.permute.xlu1 %354  ;;  %392 = vst [vmem:[%s1040_s27 + $0x20] sm:$0xff] %v384_v31  ;;  %v361_v39 = vpop.permute.xlu0 %360 }
 0x1f4   : > { %v375_v32 = vsel %vm163_vm0, %v291_v34, %v355_v35  ;;  %v378_v41 = vsel %vm163_vm0, %v297_v38, %v361_v39 }
 0x1f5   : > { %v383_v40 = vmax.f32 %v375_v32, 1e-12  ;;  %v386_v42 = vmax.f32 %v378_v41, 1e-12 }
 0x1f7   : > { %391 = vst [vmem:[%s1040_s27 + $0x18] sm:$0xff] %v383_v40  ;;  %v359_v44 = vpop.permute.xlu1 %358  ;;  %394 = vst [vmem:[%s1040_s27 + $0x30] sm:$0xff] %v386_v42 }
 0x1f8   : > { %v377_v36 = vsel %vm163_vm0, %v295_v43, %v359_v44 }
 0x1f9   : > { %v385_v45 = vmax.f32 %v377_v36, 1e-12 }
 0x1fb   : > { %393 = vst [vmem:[%s1040_s27 + $0x28] sm:$0xff] %v385_v45  ;;  %v363_v33 = vpop.permute.xlu1 %362 }
 0x1fc   : > { %v379_v48 = vsel %vm163_vm0, %v299_v47, %v363_v33 }
 0x1fd   : > { %v387_v50 = vmax.f32 %v379_v48, 1e-12 }
 0x1ff   : > { %395 = vst [vmem:[%s1040_s27 + $0x38] sm:$0xff] %v387_v50 }
 0x200   : > { %690 = shalt.err (!%p687_p3)
}
 0x201   : > { %s691_s22 = scalar_lea.hbm %s1069_s12, 1024  ;;  %s695_s25 = scalar_lea.hbm %s1119_s1, 8192 }
 0x202   : > { %p692_p4 = scmp.ne.s32.totalorder %s1069_s12, %s691_s22  ;;  %p696_p0 = scmp.lt.u32.totalorder %s1069_s12, %s1119_s1 }
 0x203   : > { %p697_p2 = scmp.lt.u32.totalorder %s695_s25, %s691_s22  ;;  %p699_p8 = scmp.lt.u32.totalorder %s691_s22, %s1069_s12 }
 0x204   : > { %p693_p6 = pnand %p692_p4, %p1127_p9 }
 0x205   : > { %p698_p5 = por %p697_p2, %p696_p0 }
 0x206   : > { %p694_p7 = pneg %p693_p6 }
 0x207   : > { %p700_p11 = por %p699_p8, %p698_p5 }
 0x209   : > { %p701_p13 = pnand %p700_p11, %p694_p7 }
 0x20b   : > { %704 = shalt.err (!%p701_p13)
}
 0x20c   : > { %s766_s4 = smov 128   ;;  %s767_s18 = smov 8  }
 0x20d   : > { %518 = dma.vmem_to_hbm [thread:$0]  (%p1127_p9), %s1062_s29, 1024, %s1069_s12, %s397_s13, %s766_s4, %s766_s4, %s767_s18  }
 0x20e PF: > { %p529_p10 = scmp.ge.s32.totalorder %s759_s11, 2  ;;  %s427_s27 = sand.u32 1, %s739_s6  }
 0x20f   : > { %p1128_p12 = scmp.ne.s32.totalorder %s1124_s21, 0  ;;  %s428_s30 = scalar_lea.sflag [#allocation4], %s427_s27 }
 0x211   : > { %p525_p1 = pnand %p529_p10, %p1128_p12 }
 0x213   : > { %734 = dma.done.wait (!%p525_p1), %s428_s30, 1024  }
 0x214   : > { %736 = vsyncadd (!%p525_p1), %s428_s30, 4294966272  ;;  %s17_s11 = sadd.s32 1, %s759_s11   ;;  %s1129_s6 = smov %s743_s7 }
 0x215   : > { %p14_p3 = scmp.ge.s32.totalorder %s17_s11, 10   ;;  %s1130_s7 = smov %s747_s8 }
 0x216   : > { %s1131_s8 = smov %s834_s20  ;;  %s1132_s9 = smov %s755_s10 }
 0x217   : > { %s1133_s10 = smov %s1135_s14  ;;  %16 = sbr.rel (!%p14_p3) target bundleno = 6 (0x6), region = 69 }
 0x21e   :  { %433 = vsyncpa [#allocation3], 1 }
 0x21f   :  { %435 = vsyncpa [#allocation3 + $0x1], 1 }
 0x220   :  { %436 = vsyncpa [#allocation4], 1 }
 0x221   :  { %438 = vsyncpa [#allocation4 + $0x1], 1 }

</bundles_post_ra>
